<compile_context>
chip_gen: v7x
topology: tpu7x:2x2x1
jax: 0.10.0
libtpu: 0.0.40
codegen_flags: <defaults>
</compile_context>

<pallas_src>
import jax
import jax.numpy as jnp
from jax.experimental import pallas as pl
from jax.experimental.pallas import tpu as pltpu

INPUT_SIZE = 12
HIDDEN1 = 256
HIDDEN2 = 128          # hidden_size // 2
OUTPUT_SIZE = 4

IN_PAD = 128           # layer-1 K padded 12 -> 128 *inside* the kernel (zero scratch cols,
                       # zero w1 rows); never touches HBM.
MAX_TM = 1024          # upper bound on the batch tile


def mlp_kernel(x_ref, w1_ref, b1_ref, w2_ref, b2_ref, w3_ref, b3_ref, o_ref, xpad_ref):
    # K-pad the compact (tm, 12) input into a zeroed (tm, 128) scratch, then cast to bf16.
    # Zeroing every step keeps correctness independent of which core ran step 0.
    xpad_ref[...] = jnp.zeros_like(xpad_ref)
    xpad_ref[:, :INPUT_SIZE] = x_ref[...]
    xb = xpad_ref[...].astype(jnp.bfloat16)

    # layer 1: (tm, 128) @ (128, 256) + b1, ReLU
    h1 = jnp.dot(xb, w1_ref[...], preferred_element_type=jnp.float32)
    h1 = jnp.maximum(h1 + b1_ref[...], 0.0).astype(jnp.bfloat16)

    # layer 2: (tm, 256) @ (256, 128) + b2, ReLU
    h2 = jnp.dot(h1, w2_ref[...], preferred_element_type=jnp.float32)
    h2 = jnp.maximum(h2 + b2_ref[...], 0.0).astype(jnp.bfloat16)

    # layer 3: (tm, 128) @ (128, 4) + b3, compact output
    out = jnp.dot(h2, w3_ref[...], preferred_element_type=jnp.float32)
    o_ref[...] = (out + b3_ref[...]).astype(o_ref.dtype)


def init_params(key):
    """f32 params mimicking nn.Linear's U(-1/sqrt(fan_in), 1/sqrt(fan_in)).
    Weights stored transposed vs torch, i.e. (in, out), so x @ W + b == torch forward."""
    keys = jax.random.split(key, 6)

    def linear(kw, kb, fan_in, fan_out):
        bound = 1.0 / jnp.sqrt(float(fan_in))
        w = jax.random.uniform(kw, (fan_in, fan_out), jnp.float32, -bound, bound)
        b = jax.random.uniform(kb, (1, fan_out), jnp.float32, -bound, bound)
        return w, b

    w1, b1 = linear(keys[0], keys[1], INPUT_SIZE, HIDDEN1)
    w2, b2 = linear(keys[2], keys[3], HIDDEN1, HIDDEN2)
    w3, b3 = linear(keys[4], keys[5], HIDDEN2, OUTPUT_SIZE)
    return (w1, b1, w2, b2, w3, b3)


def pack_params(params_f32):
    """Cast weights to bf16; zero-pad w1's K dim 12 -> 128 (done once per generation)."""
    w1, b1, w2, b2, w3, b3 = params_f32
    w1p = jnp.zeros((IN_PAD, HIDDEN1), jnp.bfloat16).at[:INPUT_SIZE, :].set(
        w1.astype(jnp.bfloat16))
    w2p = w2.astype(jnp.bfloat16)
    w3p = w3.astype(jnp.bfloat16)                     # (128, 4) compact
    return (w1p, b1, w2p, b2, w3p, b3)


def _choose_tm(batch):
    """Batch tile: as large as useful (<=1024, multiple of 128) while keeping nb >= 2
    whenever batch > 128 so the grid shards across both TensorCores on v7x."""
    if batch <= 256:
        return 128
    return max(128, min(MAX_TM, (batch // 2) // 128 * 128))


@jax.jit
def neural_network_forward(x, packed):
    """x: [B, 12] float32 -> [B, 4] float32."""
    w1, b1, w2, b2, w3, b3 = packed
    B = x.shape[0]
    tm = _choose_tm(B)
    nb = pl.cdiv(B, tm)
    bp = nb * tm

    # Only pad the batch if needed (padded rows produce ReLU(bias) garbage, sliced off).
    xp = x if bp == B else jnp.zeros((bp, INPUT_SIZE), x.dtype).at[:B].set(x)

    resident = pl.BlockSpec(memory_space=pltpu.MemorySpace.VMEM)  # whole array, VMEM-resident

    out = pl.pallas_call(
        mlp_kernel,
        out_shape=jax.ShapeDtypeStruct((bp, OUTPUT_SIZE), jnp.float32),
        grid=(nb,),
        in_specs=[
            pl.BlockSpec((tm, INPUT_SIZE), lambda i: (i, 0)),  # x: compact, contiguous tile DMA
            resident, resident,                                 # w1, b1
            resident, resident,                                 # w2, b2
            resident, resident,                                 # w3, b3
        ],
        out_specs=pl.BlockSpec((tm, OUTPUT_SIZE), lambda i: (i, 0)),  # compact writeback
        scratch_shapes=[pltpu.VMEM((tm, IN_PAD), jnp.float32)],       # K-pad staging
        compiler_params=pltpu.CompilerParams(
            dimension_semantics=("parallel",)),                 # shard batch tiles across TCs
    )(xp, w1, b1, w2, b2, w3, b3)

    return out if bp == B else out[:B]


def reference_forward(x, packed):
    """Pure-JAX reference mirroring the kernel's bf16-weight / f32-accum precision."""
    w1, b1, w2, b2, w3, b3 = packed
    xb = x.astype(jnp.bfloat16).astype(jnp.float32)
    h1 = jnp.maximum(xb @ w1[:INPUT_SIZE].astype(jnp.float32) + b1, 0.0)
    h1 = h1.astype(jnp.bfloat16).astype(jnp.float32)
    h2 = jnp.maximum(h1 @ w2.astype(jnp.float32) + b2, 0.0)
    h2 = h2.astype(jnp.bfloat16).astype(jnp.float32)
    return h2 @ w3.astype(jnp.float32) + b3


# TODO(synk): NeuralNetwork.save() (torch.save of state_dict to disk) is host-side I/O,
# not part of the forward pass, so it is intentionally not ported to a kernel.

if __name__ == "__main__":
    key = jax.random.PRNGKey(0)
    kx, kp = jax.random.split(key)

    BATCH = 300  # non-multiple of 128: exercises batch padding and grid=(3,) with tm=128
    x = jax.random.normal(kx, (BATCH, INPUT_SIZE), jnp.float32)
    params = init_params(kp)
    packed = pack_params(params)

    out = neural_network_forward(x, packed)
    out = jax.block_until_ready(out)

    ref = reference_forward(x, packed)
    assert out.shape == (BATCH, OUTPUT_SIZE)
    assert jnp.allclose(out, ref, atol=2e-2, rtol=2e-2), float(
        jnp.max(jnp.abs(out - ref)))

    print("KERNEL_OK")
</pallas_src>

<mosaic_0001>
module attributes {stable_mosaic.version = 11 : i64} {
  func.func @mlp_kernel(%arg0: i32, %arg1: memref<128x12xf32, #tpu.memory_space<vmem>>, %arg2: memref<128x256xbf16, #tpu.memory_space<vmem>>, %arg3: memref<1x256xf32, #tpu.memory_space<vmem>>, %arg4: memref<256x128xbf16, #tpu.memory_space<vmem>>, %arg5: memref<1x128xf32, #tpu.memory_space<vmem>>, %arg6: memref<128x4xbf16, #tpu.memory_space<vmem>>, %arg7: memref<1x4xf32, #tpu.memory_space<vmem>>, %arg8: memref<128x4xf32, #tpu.memory_space<vmem>>, %arg9: memref<128x128xf32, #tpu.memory_space<vmem>>) attributes {dimension_semantics = [#tpu.dimension_semantics<parallel>], iteration_bounds = array<i64: 3>, scalar_prefetch = 0 : i64, scratch_operands = 1 : i64, tpu.core_type = #tpu.core_type<tc>, window_params = [{transform_indices = @transform_0, window_bounds = array<i64: 128, 12>}, {pipeline_mode = #tpu.pipeline_mode<synchronous>, transform_indices = @transform_1, window_bounds = array<i64: 128, 256>}, {pipeline_mode = #tpu.pipeline_mode<synchronous>, transform_indices = @transform_2, window_bounds = array<i64: 1, 256>}, {pipeline_mode = #tpu.pipeline_mode<synchronous>, transform_indices = @transform_3, window_bounds = array<i64: 256, 128>}, {pipeline_mode = #tpu.pipeline_mode<synchronous>, transform_indices = @transform_4, window_bounds = array<i64: 1, 128>}, {pipeline_mode = #tpu.pipeline_mode<synchronous>, transform_indices = @transform_5, window_bounds = array<i64: 128, 4>}, {pipeline_mode = #tpu.pipeline_mode<synchronous>, transform_indices = @transform_6, window_bounds = array<i64: 1, 4>}, {transform_indices = @transform_7, window_bounds = array<i64: 128, 4>}]} {
    %cst = arith.constant 0.000000e+00 : f32
    %0 = vector.broadcast %cst : f32 to vector<128x128xf32>
    %c0 = arith.constant 0 : index
    %c0_0 = arith.constant 0 : index
    %1 = vector.load %arg9[%c0, %c0_0] : memref<128x128xf32, #tpu.memory_space<vmem>>, vector<128x128xf32>
    tpu.vector_store %arg9[%c0, %c0_0], %0 {strides = array<i32>} : memref<128x128xf32, #tpu.memory_space<vmem>>, vector<128x128xf32>,
    %c0_1 = arith.constant 0 : index
    %c0_2 = arith.constant 0 : index
    %2 = vector.load %arg1[%c0_1, %c0_2] : memref<128x12xf32, #tpu.memory_space<vmem>>, vector<128x12xf32>
    %c0_3 = arith.constant 0 : index
    %c0_4 = arith.constant 0 : index
    %3 = vector.load %arg9[%c0_3, %c0_4] : memref<128x128xf32, #tpu.memory_space<vmem>>, vector<128x12xf32>
    tpu.vector_store %arg9[%c0_3, %c0_4], %2 {strides = array<i32>} : memref<128x128xf32, #tpu.memory_space<vmem>>, vector<128x12xf32>,
    %c0_5 = arith.constant 0 : index
    %c0_6 = arith.constant 0 : index
    %4 = vector.load %arg9[%c0_5, %c0_6] : memref<128x128xf32, #tpu.memory_space<vmem>>, vector<128x128xf32>
    %5 = arith.truncf %4 : vector<128x128xf32> to vector<128x128xbf16>
    %c0_7 = arith.constant 0 : index
    %c0_8 = arith.constant 0 : index
    %6 = vector.load %arg2[%c0_7, %c0_8] : memref<128x256xbf16, #tpu.memory_space<vmem>>, vector<128x256xbf16>
    %cst_9 = arith.constant dense<0.000000e+00> : vector<128x256xf32>
    %7 = tpu.matmul %5, %6, %cst_9 {dimension_numbers = #tpu.dot_dimension_numbers<[1], [0], [0], [1], [0, 0, 1, 1], [], []>} : vector<128x128xbf16>, vector<128x256xbf16>, vector<128x256xf32> -> vector<128x256xf32>
    %c0_10 = arith.constant 0 : index
    %c0_11 = arith.constant 0 : index
    %8 = vector.load %arg3[%c0_10, %c0_11] : memref<1x256xf32, #tpu.memory_space<vmem>>, vector<1x256xf32>
    %9 = vector.broadcast %8 : vector<1x256xf32> to vector<128x256xf32>
    %10 = arith.addf %7, %9 : vector<128x256xf32>
    %cst_12 = arith.constant 0.000000e+00 : f32
    %11 = vector.broadcast %cst_12 : f32 to vector<128x256xf32>
    %12 = arith.maximumf %10, %11 : vector<128x256xf32>
    %13 = arith.truncf %12 : vector<128x256xf32> to vector<128x256xbf16>
    %c0_13 = arith.constant 0 : index
    %c0_14 = arith.constant 0 : index
    %14 = vector.load %arg4[%c0_13, %c0_14] : memref<256x128xbf16, #tpu.memory_space<vmem>>, vector<256x128xbf16>
    %cst_15 = arith.constant dense<0.000000e+00> : vector<128x128xf32>
    %15 = tpu.matmul %13, %14, %cst_15 {dimension_numbers = #tpu.dot_dimension_numbers<[1], [0], [0], [1], [0, 0, 1, 1], [], []>} : vector<128x256xbf16>, vector<256x128xbf16>, vector<128x128xf32> -> vector<128x128xf32>
    %c0_16 = arith.constant 0 : index
    %c0_17 = arith.constant 0 : index
    %16 = vector.load %arg5[%c0_16, %c0_17] : memref<1x128xf32, #tpu.memory_space<vmem>>, vector<1x128xf32>
    %17 = vector.broadcast %16 : vector<1x128xf32> to vector<128x128xf32>
    %18 = arith.addf %15, %17 : vector<128x128xf32>
    %cst_18 = arith.constant 0.000000e+00 : f32
    %19 = vector.broadcast %cst_18 : f32 to vector<128x128xf32>
    %20 = arith.maximumf %18, %19 : vector<128x128xf32>
    %21 = arith.truncf %20 : vector<128x128xf32> to vector<128x128xbf16>
    %c0_19 = arith.constant 0 : index
    %c0_20 = arith.constant 0 : index
    %22 = vector.load %arg6[%c0_19, %c0_20] : memref<128x4xbf16, #tpu.memory_space<vmem>>, vector<128x4xbf16>
    %cst_21 = arith.constant dense<0.000000e+00> : vector<128x4xf32>
    %23 = tpu.matmul %21, %22, %cst_21 {dimension_numbers = #tpu.dot_dimension_numbers<[1], [0], [0], [1], [0, 0, 1, 1], [], []>} : vector<128x128xbf16>, vector<128x4xbf16>, vector<128x4xf32> -> vector<128x4xf32>
    %c0_22 = arith.constant 0 : index
    %c0_23 = arith.constant 0 : index
    %24 = vector.load %arg7[%c0_22, %c0_23] : memref<1x4xf32, #tpu.memory_space<vmem>>, vector<1x4xf32>
    %25 = vector.broadcast %24 : vector<1x4xf32> to vector<128x4xf32>
    %26 = arith.addf %23, %25 : vector<128x4xf32>
    %c0_24 = arith.constant 0 : index
    %c0_25 = arith.constant 0 : index
    %27 = vector.load %arg8[%c0_24, %c0_25] : memref<128x4xf32, #tpu.memory_space<vmem>>, vector<128x4xf32>
    tpu.vector_store %arg8[%c0_24, %c0_25], %26 {strides = array<i32>} : memref<128x4xf32, #tpu.memory_space<vmem>>, vector<128x4xf32>,
    return
  }
  func.func @transform_0(%arg0: i32) -> (i32, i32) {
    %c0_i32 = arith.constant 0 : i32
    %c0_i32_0 = arith.constant 0 : i32
    return %arg0, %c0_i32 : i32, i32
  }
  func.func @transform_1(%arg0: i32) -> (i32, i32) {
    %c0_i32 = arith.constant 0 : i32
    %c0_i32_0 = arith.constant 0 : i32
    %c0_i32_1 = arith.constant 0 : i32
    return %c0_i32, %c0_i32_0 : i32, i32
  }
  func.func @transform_2(%arg0: i32) -> (i32, i32) {
    %c0_i32 = arith.constant 0 : i32
    %c0_i32_0 = arith.constant 0 : i32
    %c0_i32_1 = arith.constant 0 : i32
    return %c0_i32, %c0_i32_0 : i32, i32
  }
  func.func @transform_3(%arg0: i32) -> (i32, i32) {
    %c0_i32 = arith.constant 0 : i32
    %c0_i32_0 = arith.constant 0 : i32
    %c0_i32_1 = arith.constant 0 : i32
    return %c0_i32, %c0_i32_0 : i32, i32
  }
  func.func @transform_4(%arg0: i32) -> (i32, i32) {
    %c0_i32 = arith.constant 0 : i32
    %c0_i32_0 = arith.constant 0 : i32
    %c0_i32_1 = arith.constant 0 : i32
    return %c0_i32, %c0_i32_0 : i32, i32
  }
  func.func @transform_5(%arg0: i32) -> (i32, i32) {
    %c0_i32 = arith.constant 0 : i32
    %c0_i32_0 = arith.constant 0 : i32
    %c0_i32_1 = arith.constant 0 : i32
    return %c0_i32, %c0_i32_0 : i32, i32
  }
  func.func @transform_6(%arg0: i32) -> (i32, i32) {
    %c0_i32 = arith.constant 0 : i32
    %c0_i32_0 = arith.constant 0 : i32
    %c0_i32_1 = arith.constant 0 : i32
    return %c0_i32, %c0_i32_0 : i32, i32
  }
  func.func @transform_7(%arg0: i32) -> (i32, i32) {
    %c0_i32 = arith.constant 0 : i32
    %c0_i32_0 = arith.constant 0 : i32
    return %arg0, %c0_i32 : i32, i32
  }
}

</mosaic_0001>

<bundles_post_ra>
// kernel: neural_network_forward.1
= control target key start
LH: loop header
LB: loop body
LE: loop exit
PB: predicated region body
PF: predicated region fallthrough
CT: control target
= control target key end

     0   :  { %s1411_s24 = smov 0   ;;  %s1695_s0 = inlined_call_operand.vmem [shape: f32[384,12], index: 0, kind: input, shape index: {}]   ;;  %s1696_s1 = inlined_call_operand.vmem [shape: bf16[128,256], index: 1, kind: input, shape index: {}]   ;;  %s1697_s2 = inlined_call_operand.vmem [shape: f32[1,256], index: 2, kind: input, shape index: {}]   ;;  %s1698_s3 = inlined_call_operand.vmem [shape: bf16[256,128], index: 3, kind: input, shape index: {}]   ;;  %s1699_s4 = inlined_call_operand.vmem [shape: f32[1,128], index: 4, kind: input, shape index: {}]   ;;  %s1700_s5 = inlined_call_operand.vmem [shape: bf16[128,4], index: 5, kind: input, shape index: {}]   ;;  %s1701_s6 = inlined_call_operand.vmem [shape: f32[1,4], index: 6, kind: input, shape index: {}]   ;;  %s1702_s7 = inlined_call_operand.vmem [shape: f32[384,4], index: 7, kind: output, shape index: {}]  }
   0x1 LB: > { %s1122_s25 = sadd.s32 4294967295, %s1367_s24   ;;  %p1126_p0 = scmp.ge.s32.totalorder %s1367_s24, 1  ;;  %s1367_s24 = sphi %s1411_s24, %s17_s24  }
   0x2   : > { %p238_p1 = scmp.lt.s32.totalorder %s1367_s24, 4 }
   0x4   : > { %p239_p2 = pnand %p1126_p0, %p238_p1 }
   0x5   : > { %v1313_v0 = vld [vmem:[%s1696_s1 + $0x4] ss:$8 sps:$4 sm:$0xff] (!%p239_p2)   ;;  %s1127_s28 = sshll.u32 (!%p239_p2), %s1122_s25, 4  ;;  %v1315_v1 = vld [vmem:[%s1696_s1] ss:$8 sps:$4 sm:$0xff] (!%p239_p2)   ;;  %v1369_v2 = vmov (!%p239_p2), 0  }
   0x6   : > { %242 = sbr.rel (%p239_p2) target bundleno = 757 (0x2f5), region = 48  ;;  %496 = vmatprep.mubr.bf16.mxu0 (!%p239_p2), %v1369_v2  ;;  %p271_p3 = scmp.lt.s32.totalorder (!%p239_p2), %s1127_s28, 47  ;;  %464 = vmatprep.subr.bf16.mxu0 (!%p239_p2), %v1313_v0  ;;  %v1316_v3 = vld [vmem:[%s1696_s1 + $0x14] ss:$8 sps:$4 sm:$0xff] (!%p239_p2)   ;;  %v1370_v4 = vmov (!%p239_p2), 0.0   ;;  %vm315_vm0 = vcmask (!%p239_p2), 97280  }
   0x7   : > { %283 = vst [vmem:[#allocation2] sm:$0xff] (!%p239_p2), %v1370_v4  ;;  %284 = vst [vmem:[#allocation2 + $0x8] sm:$0xff] (!%p239_p2), %v1370_v4  ;;  %465 = vmatpush1.bf16.msra.mxu0 (!%p239_p2), %v1315_v1  ;;  %v1318_v5 = vld [vmem:[%s1696_s1 + $0x10] ss:$8 sps:$4 sm:$0xff] (!%p239_p2)   ;;  %v1319_v6 = vld [vmem:[%s1696_s1 + $0x24] ss:$8 sps:$4 sm:$0xff] (!%p239_p2)  }
   0x8   : > { %285 = vst [vmem:[#allocation2 + $0x10] sm:$0xff] (!%p239_p2), %v1370_v4  ;;  %286 = vst [vmem:[#allocation2 + $0x18] sm:$0xff] (!%p239_p2), %v1370_v4  ;;  %466 = vmatprep.subr.bf16.mxu0 (!%p239_p2), %v1316_v3  ;;  %v1321_v7 = vld [vmem:[%s1696_s1 + $0x20] ss:$8 sps:$4 sm:$0xff] (!%p239_p2)   ;;  %v1322_v8 = vld [vmem:[%s1696_s1 + $0x34] ss:$8 sps:$4 sm:$0xff] (!%p239_p2)  }
   0x9   : > { %287 = vst [vmem:[#allocation2 + $0x20] sm:$0xff] (!%p239_p2), %v1370_v4  ;;  %288 = vst [vmem:[#allocation2 + $0x28] sm:$0xff] (!%p239_p2), %v1370_v4  ;;  %v1324_v9 = vld [vmem:[%s1696_s1 + $0x30] ss:$8 sps:$4 sm:$0xff] (!%p239_p2)   ;;  %v1325_v10 = vld [vmem:[%s1696_s1 + $0x44] ss:$8 sps:$4 sm:$0xff] (!%p239_p2)  }
   0xa   : > { %289 = vst [vmem:[#allocation2 + $0x30] sm:$0xff] (!%p239_p2), %v1370_v4  ;;  %290 = vst [vmem:[#allocation2 + $0x38] sm:$0xff] (!%p239_p2), %v1370_v4  ;;  %v1327_v18 = vld [vmem:[%s1696_s1 + $0x40] ss:$8 sps:$4 sm:$0xff] (!%p239_p2)   ;;  %v1328_v22 = vld [vmem:[%s1696_s1 + $0x54] ss:$8 sps:$4 sm:$0xff] (!%p239_p2)  }
   0xb   : > { %291 = vst [vmem:[#allocation2 + $0x40] sm:$0xff] (!%p239_p2), %v1370_v4  ;;  %292 = vst [vmem:[#allocation2 + $0x48] sm:$0xff] (!%p239_p2), %v1370_v4  ;;  %467 = vmatpush1.bf16.msra.mxu0 (!%p239_p2), %v1318_v5  ;;  %v1337_v29 = vld [vmem:[%s1698_s3 + $0x40] sm:$0xff] (!%p239_p2)   ;;  %v1330_v31 = vld [vmem:[%s1696_s1 + $0x50] ss:$8 sps:$4 sm:$0xff] (!%p239_p2)   ;;  %vm1049_vm1 = vcmask (!%p239_p2), 31744  }
   0xc   : > { %293 = vst [vmem:[#allocation2 + $0x50] sm:$0xff] (!%p239_p2), %v1370_v4  ;;  %294 = vst [vmem:[#allocation2 + $0x58] sm:$0xff] (!%p239_p2), %v1370_v4  ;;  %468 = vmatprep.subr.bf16.mxu0 (!%p239_p2), %v1319_v6  ;;  %v1338_v30 = vld [vmem:[%s1698_s3] sm:$0xff] (!%p239_p2)   ;;  %1175 = vmatprep.subr.bf16.mxu1 (!%p239_p2), %v1337_v29  ;;  %v1334_v34 = vld [vmem:[%s1696_s1 + $0x74] ss:$8 sps:$4 sm:$0xff] (!%p239_p2)  }
   0xd   : > { %295 = vst [vmem:[#allocation2 + $0x60] sm:$0xff] %v1370_v4  ;;  %296 = vst [vmem:[#allocation2 + $0x68] sm:$0xff] %v1370_v4  ;;  %s1704_s28 = smov (!%p271_p3, %s1127_s28), 47  ;;  %1176 = vmatpush3.bf16.msra.mxu1 %v1338_v30  ;;  %v1331_v32 = vld [vmem:[%s1696_s1 + $0x64] ss:$8 sps:$4 sm:$0xff]   ;;  %v1341_v40 = vld [vmem:[%s1698_s3 + $0x50] sm:$0xff]  }
   0xe   : > { %297 = vst [vmem:[#allocation2 + $0x70] sm:$0xff] %v1370_v4  ;;  %298 = vst [vmem:[#allocation2 + $0x78] sm:$0xff] %v1370_v4  ;;  %s1128_s14 = sshll.u32 %s1704_s28, 3  ;;  %v1333_v33 = vld [vmem:[%s1696_s1 + $0x60] ss:$8 sps:$4 sm:$0xff]   ;;  %v1342_v41 = vld [vmem:[%s1698_s3 + $0x10] sm:$0xff]  }
   0xf   : > { %s1447_s19 = scalar_lea.vmem %s1695_s0, %s1128_s14  ;;  %469 = vmatpush1.bf16.msra.mxu0 %v1321_v7  ;;  %v1339_v35 = vld [vmem:[%s1698_s3 + $0x48] sm:$0xff]   ;;  %v1336_v36 = vld [vmem:[%s1696_s1 + $0x70] ss:$8 sps:$4 sm:$0xff]   ;;  %v1345_v45 = vld [vmem:[%s1698_s3 + $0x60] sm:$0xff]   ;;  %s1658_s16 = scalar_lea.vmem %s1702_s7, %s1128_s14 }
  0x10   : > { %v299_v11 = vld [vmem:[%s1447_s19] sm:$0xff]  ;;  %v300_v12 = vld [vmem:[%s1447_s19 + $0x8] sm:$0xff]  ;;  %v301_v13 = vld [vmem:[%s1447_s19 + $0x10] sm:$0xff]  ;;  %470 = vmatprep.subr.bf16.mxu0 %v1322_v8  ;;  %1177 = vmatprep.subr.bf16.mxu1 %v1339_v35 }
  0x11   : > { %316 = vst.msk [vmem:[#allocation2] sm:$0xff] %vm315_vm0, %v299_v11  ;;  %v302_v14 = vld [vmem:[%s1447_s19 + $0x18] sm:$0xff]  ;;  %317 = vst.msk [vmem:[#allocation2 + $0x8] sm:$0xff] %vm315_vm0, %v300_v12  ;;  %v303_v15 = vld [vmem:[%s1447_s19 + $0x20] sm:$0xff] }
  0x12   : > { %318 = vst.msk [vmem:[#allocation2 + $0x10] sm:$0xff] %vm315_vm0, %v301_v13  ;;  %319 = vst.msk [vmem:[#allocation2 + $0x18] sm:$0xff] %vm315_vm0, %v302_v14  ;;  %v304_v16 = vld [vmem:[%s1447_s19 + $0x28] sm:$0xff]  ;;  %v305_v17 = vld [vmem:[%s1447_s19 + $0x30] sm:$0xff]  ;;  %v374_v13 = vlaneseq }
  0x13   : > { %320 = vst.msk [vmem:[#allocation2 + $0x20] sm:$0xff] %vm315_vm0, %v303_v15  ;;  %321 = vst.msk [vmem:[#allocation2 + $0x28] sm:$0xff] %vm315_vm0, %v304_v16  ;;  %v306_v19 = vld [vmem:[%s1447_s19 + $0x38] sm:$0xff]  ;;  %v307_v20 = vld [vmem:[%s1447_s19 + $0x40] sm:$0xff]  ;;  %471 = vmatpush1.bf16.msra.mxu0 %v1324_v9 }
  0x14   : > { %322 = vst.msk [vmem:[#allocation2 + $0x30] sm:$0xff] %vm315_vm0, %v305_v17  ;;  %v308_v21 = vld [vmem:[%s1447_s19 + $0x48] sm:$0xff]  ;;  %323 = vst.msk [vmem:[#allocation2 + $0x38] sm:$0xff] %vm315_vm0, %v306_v19  ;;  %v309_v23 = vld [vmem:[%s1447_s19 + $0x50] sm:$0xff]  ;;  %472 = vmatprep.subr.bf16.mxu0 %v1325_v10  ;;  %v375_v14 = vshrl.u32 %v374_v13, 7 }
  0x15   : > { %324 = vst.msk [vmem:[#allocation2 + $0x40] sm:$0xff] %vm315_vm0, %v307_v20  ;;  %325 = vst.msk [vmem:[#allocation2 + $0x48] sm:$0xff] %vm315_vm0, %v308_v21  ;;  %v310_v24 = vld [vmem:[%s1447_s19 + $0x58] sm:$0xff]  ;;  %v311_v25 = vld [vmem:[%s1447_s19 + $0x60] sm:$0xff] }
  0x16   : > { %326 = vst.msk [vmem:[#allocation2 + $0x50] sm:$0xff] %vm315_vm0, %v309_v23  ;;  %327 = vst.msk [vmem:[#allocation2 + $0x58] sm:$0xff] %vm315_vm0, %v310_v24  ;;  %v312_v26 = vld [vmem:[%s1447_s19 + $0x68] sm:$0xff]  ;;  %v313_v27 = vld [vmem:[%s1447_s19 + $0x70] sm:$0xff]  ;;  %v376_v15 = vsub.s32 0, %v375_v14  ;;  %v380_v17 = vsub.s32 1, %v375_v14 }
  0x17   : > { %328 = vst.msk [vmem:[#allocation2 + $0x60] sm:$0xff] %vm315_vm0, %v311_v25  ;;  %v314_v28 = vld [vmem:[%s1447_s19 + $0x78] sm:$0xff]  ;;  %329 = vst.msk [vmem:[#allocation2 + $0x68] sm:$0xff] %vm315_vm0, %v312_v26  ;;  %473 = vmatpush1.bf16.msra.mxu0 %v1327_v18  ;;  %v1340_v39 = vld [vmem:[%s1698_s3 + $0x8] sm:$0xff]  }
  0x18   : > { %330 = vst.msk [vmem:[#allocation2 + $0x70] sm:$0xff] %vm315_vm0, %v313_v27  ;;  %331 = vst.msk [vmem:[#allocation2 + $0x78] sm:$0xff] %vm315_vm0, %v314_v28  ;;  %474 = vmatprep.subr.bf16.mxu0 %v1328_v22  ;;  %v332_v37 = vld [vmem:[#allocation2] sm:$0xff]  ;;  %v333_v38 = vld [vmem:[#allocation2 + $0x8] sm:$0xff]  ;;  %1178 = vmatpush3.bf16.msra.mxu1 %v1340_v39 }
  0x19   : > { %1179 = vmatprep.subr.bf16.mxu1 %v1341_v40  ;;  %v1343_v42 = vld [vmem:[%s1698_s3 + $0x58] sm:$0xff]   ;;  %v348_v43 = vpack.c.bf16 %v333_v38, %v332_v37  ;;  %v334_v46 = vld [vmem:[#allocation2 + $0x10] sm:$0xff]  ;;  %v1346_v48 = vld [vmem:[%s1698_s3 + $0x20] sm:$0xff]  }
  0x1a   : > { %v1344_v44 = vld [vmem:[%s1698_s3 + $0x18] sm:$0xff]   ;;  %v1347_v49 = vld [vmem:[%s1698_s3 + $0x68] sm:$0xff]   ;;  %v336_v51 = vld [vmem:[#allocation2 + $0x20] sm:$0xff] }
  0x1b   : > { %475 = vmatpush1.bf16.msra.mxu0 %v1330_v31  ;;  %v335_v47 = vld [vmem:[#allocation2 + $0x18] sm:$0xff]  ;;  %v337_v52 = vld [vmem:[#allocation2 + $0x28] sm:$0xff]  ;;  %v338_v54 = vld [vmem:[#allocation2 + $0x30] sm:$0xff] }
  0x1c   : > { %476 = vmatprep.subr.bf16.mxu0 %v1331_v32  ;;  %1180 = vmatpush3.bf16.msra.mxu1 %v1342_v41  ;;  %v349_v50 = vpack.c.bf16 %v335_v47, %v334_v46  ;;  %v350_v53 = vpack.c.bf16 %v337_v52, %v336_v51  ;;  %v339_v55 = vld [vmem:[#allocation2 + $0x38] sm:$0xff]  ;;  %v340_v57 = vld [vmem:[#allocation2 + $0x40] sm:$0xff]  ;;  %v341_v58 = vld [vmem:[#allocation2 + $0x48] sm:$0xff] }
  0x1d   : > { %1181 = vmatprep.subr.bf16.mxu1 %v1343_v42  ;;  %v351_v56 = vpack.c.bf16 %v339_v55, %v338_v54  ;;  %v352_v59 = vpack.c.bf16 %v341_v58, %v340_v57  ;;  %v342_v60 = vld [vmem:[#allocation2 + $0x50] sm:$0xff]  ;;  %v343_v61 = vld [vmem:[#allocation2 + $0x58] sm:$0xff]  ;;  %v1348_v6 = vld [vmem:[%s1698_s3 + $0x28] sm:$0xff]  }
  0x1e   : > { %v353_v62 = vpack.c.bf16 %v343_v61, %v342_v60  ;;  %v344_v63 = vld [vmem:[#allocation2 + $0x60] sm:$0xff]  ;;  %v345_v0 = vld [vmem:[#allocation2 + $0x68] sm:$0xff]  ;;  %v1349_v7 = vld [vmem:[%s1698_s3 + $0x70] sm:$0xff]  }
  0x1f   : > { %477 = vmatpush1.bf16.msra.mxu0 %v1333_v33  ;;  %v354_v1 = vpack.c.bf16 %v345_v0, %v344_v63  ;;  %v346_v3 = vld [vmem:[#allocation2 + $0x70] sm:$0xff]  ;;  %v347_v4 = vld [vmem:[#allocation2 + $0x78] sm:$0xff]  ;;  %v1353_v10 = vld [vmem:[%s1700_s5] sm:$0xff]  }
  0x20   : > { %478 = vmatprep.subr.bf16.mxu0 %v1334_v34  ;;  %1182 = vmatpush3.bf16.msra.mxu1 %v1344_v44  ;;  %v355_v5 = vpack.c.bf16 %v347_v4, %v346_v3  ;;  %v1350_v8 = vld [vmem:[%s1698_s3 + $0x30] sm:$0xff]   ;;  %v1352_v9 = vld [vmem:[%s1698_s3 + $0x38] sm:$0xff]   ;;  %v1354_v11 = vld [vmem:[%s1700_s5 + $0x8] sm:$0xff]  }
  0x21   : > { %1183 = vmatprep.subr.bf16.mxu1 %v1345_v45  ;;  %v1355_v12 = vld [vmem:[%s1700_s5 + $0x10] sm:$0xff]   ;;  %v372_v16 = vld [vmem:[%s1697_s2] sm:$0x3] }
  0x22   : > { %v1578_v18 = vrot.slane %v372_v16, %v376_v15  ;;  %v1580_v19 = vrot.slane %v372_v16, %v380_v17 }
  0x23   : > { %479 = vmatpush1.bf16.msra.mxu0 %v1336_v36 }
  0x24   : > { %1184 = vmatpush3.bf16.msra.mxu1 %v1346_v48  ;;  %1255 = vmatprep.subr.bf16.mxu0 %v1353_v10 }
  0x25   : > { %1185 = vmatprep.subr.bf16.mxu1 %v1347_v49 }
  0x26   : > { %497 = vmatmul.mubr.bf16.vlgmr.msra.gmra.mrb[0].mxu0 %v348_v43 }
  0x27   : > { %506 = vmatprep.mubr.bf16.mxu0 %v1369_v2  ;;  %1256 = vmatpush3.bf16.msra.mxu0 %v1353_v10 }
  0x28   : > { %1186 = vmatpush3.bf16.msra.mxu1 %v1348_v6  ;;  %1257 = vmatprep.subr.bf16.mxu0 %v1354_v11 }
  0x29   : > { %1187 = vmatprep.subr.bf16.mxu1 %v1349_v7 }
  0x2b   : > { %1258 = vmatpush3.bf16.msra.mxu0 %v1354_v11 }
  0x2c   : > { %1188 = vmatpush3.bf16.msra.mxu1 %v1350_v8  ;;  %1259 = vmatprep.subr.bf16.mxu0 %v1355_v12 }
  0x2e   : > { %507 = vmatmul.mubr.bf16.gmra.mrb[4].mxu0 %v349_v50 }
  0x2f   : > { %516 = vmatprep.mubr.bf16.mxu0 %v1369_v2  ;;  %1260 = vmatpush3.bf16.msra.mxu0 %v1355_v12 }
  0x36   : > { %517 = vmatmul.mubr.bf16.gmra.mrb[8].mxu0 %v350_v53 }
  0x37   : > { %526 = vmatprep.mubr.bf16.mxu0 %v1369_v2 }
  0x3e   : > { %527 = vmatmul.mubr.bf16.gmra.mrb[12].mxu0 %v351_v56 }
  0x3f   : > { %536 = vmatprep.mubr.bf16.mxu0 %v1369_v2 }
  0x46   : > { %537 = vmatmul.mubr.bf16.gmra.mrb[16].mxu0 %v352_v59 }
  0x47   : > { %546 = vmatprep.mubr.bf16.mxu0 %v1369_v2 }
  0x4e   : > { %547 = vmatmul.mubr.bf16.gmra.mrb[20].mxu0 %v353_v62 }
  0x4f   : > { %556 = vmatprep.mubr.bf16.mxu0 %v1369_v2 }
  0x56   : > { %557 = vmatmul.mubr.bf16.gmra.mrb[24].mxu0 %v354_v1 }
  0x57   : > { %566 = vmatprep.mubr.bf16.mxu0 %v1369_v2  ;;  %v1351_v2 = vld [vmem:[%s1698_s3 + $0x78] sm:$0xff]  }
  0x58   : > { %1189 = vmatprep.subr.bf16.mxu1 %v1351_v2 }
  0x59   : > { %1190 = vmatpush3.bf16.msra.mxu1 %v1352_v9 }
  0x5a   : > { %1287 = vmatprep.subr.bf16.mxu1 %v1353_v10 }
  0x5e   : > { %567 = vmatmul.mubr.bf16.gmra.mrb[28].mxu0 %v355_v5 }
  0xf9   : > { %v498_v20 = vpop.f32.mrb[0].mxu0 }
  0xfa   : > { %v499_v21 = vadd.f32 %v498_v20, %v1578_v18  ;;  %v500_v22 = vpop.f32.mrb[1].mxu0 }
  0xfb   : > { %v501_v23 = vadd.f32 %v500_v22, %v1580_v19  ;;  %v502_v24 = vpop.f32.mrb[2].mxu0 }
  0xfc   : > { %v503_v25 = vadd.f32 %v502_v24, %v1578_v18  ;;  %v504_v26 = vpop.f32.mrb[3].mxu0  ;;  %v577_v28 = vmax.f32 %v499_v21, 0.0 }
  0xfd   : > { %v505_v27 = vadd.f32 %v504_v26, %v1580_v19  ;;  %v578_v30 = vmax.f32 %v501_v23, 0.0 }
  0xfe   : > { %v579_v29 = vmax.f32 %v503_v25, 0.0 }
  0xff   : > { %v580_v31 = vmax.f32 %v505_v27, 0.0 }
 0x100   : > { %v609_v32 = vpack.c.bf16 %v579_v29, %v577_v28 }
 0x101   : > { %v508_v33 = vpop.f32.mrb[4].mxu0  ;;  %v610_v34 = vpack.c.bf16 %v580_v31, %v578_v30 }
 0x102   : > { %v509_v35 = vadd.f32 %v508_v33, %v1578_v18  ;;  %v510_v36 = vpop.f32.mrb[5].mxu0 }
 0x103   : > { %v511_v37 = vadd.f32 %v510_v36, %v1580_v19  ;;  %v512_v38 = vpop.f32.mrb[6].mxu0  ;;  %792 = vmatprep.mubr.bf16.mxu1 %v610_v34 }
 0x104   : > { %v513_v39 = vadd.f32 %v512_v38, %v1578_v18  ;;  %v514_v40 = vpop.f32.mrb[7].mxu0  ;;  %793 = vmatmul.mubr.bf16.vlgmr.msra.gmra.mrb[0].mxu1 %v609_v32  ;;  %v581_v42 = vmax.f32 %v509_v35, 0.0 }
 0x105   : > { %v515_v41 = vadd.f32 %v514_v40, %v1580_v19  ;;  %1295 = vmatpush3.bf16.msra.mxu1 %v1353_v10  ;;  %v582_v44 = vmax.f32 %v511_v37, 0.0 }
 0x106   : > { %v583_v43 = vmax.f32 %v513_v39, 0.0  ;;  %1288 = vmatprep.subr.bf16.mxu1 %v1354_v11 }
 0x107   : > { %v584_v45 = vmax.f32 %v515_v41, 0.0 }
 0x108   : > { %v611_v46 = vpack.c.bf16 %v583_v43, %v581_v42 }
 0x109   : > { %v612_v47 = vpack.c.bf16 %v584_v45, %v582_v44  ;;  %v518_v48 = vpop.f32.mrb[8].mxu0  ;;  %1296 = vmatpush3.bf16.msra.mxu1 %v1354_v11 }
 0x10a   : > { %v519_v49 = vadd.f32 %v518_v48, %v1578_v18  ;;  %v520_v50 = vpop.f32.mrb[9].mxu0  ;;  %1289 = vmatprep.subr.bf16.mxu1 %v1355_v12 }
 0x10b   : > { %v521_v51 = vadd.f32 %v520_v50, %v1580_v19  ;;  %v522_v52 = vpop.f32.mrb[10].mxu0  ;;  %800 = vmatprep.mubr.bf16.mxu1 %v612_v47 }
 0x10c   : > { %v523_v53 = vadd.f32 %v522_v52, %v1578_v18  ;;  %v524_v54 = vpop.f32.mrb[11].mxu0  ;;  %801 = vmatmul.mubr.bf16.gmra.mrb[4].mxu1 %v611_v46  ;;  %v585_v56 = vmax.f32 %v519_v49, 0.0 }
 0x10d   : > { %v525_v55 = vadd.f32 %v524_v54, %v1580_v19  ;;  %1297 = vmatpush3.bf16.msra.mxu1 %v1355_v12  ;;  %v586_v58 = vmax.f32 %v521_v51, 0.0 }
 0x10e   : > { %v587_v57 = vmax.f32 %v523_v53, 0.0 }
 0x10f   : > { %v588_v59 = vmax.f32 %v525_v55, 0.0 }
 0x110   : > { %v613_v60 = vpack.c.bf16 %v587_v57, %v585_v56 }
 0x111   : > { %v614_v61 = vpack.c.bf16 %v588_v59, %v586_v58  ;;  %v528_v62 = vpop.f32.mrb[12].mxu0 }
 0x112   : > { %v529_v63 = vadd.f32 %v528_v62, %v1578_v18  ;;  %v530_v0 = vpop.f32.mrb[13].mxu0 }
 0x113   : > { %v531_v1 = vadd.f32 %v530_v0, %v1580_v19  ;;  %v532_v3 = vpop.f32.mrb[14].mxu0  ;;  %808 = vmatprep.mubr.bf16.mxu1 %v614_v61 }
 0x114   : > { %v533_v4 = vadd.f32 %v532_v3, %v1578_v18  ;;  %v534_v5 = vpop.f32.mrb[15].mxu0  ;;  %809 = vmatmul.mubr.bf16.gmra.mrb[8].mxu1 %v613_v60  ;;  %v589_v7 = vmax.f32 %v529_v63, 0.0 }
 0x115   : > { %v535_v6 = vadd.f32 %v534_v5, %v1580_v19  ;;  %v590_v2 = vmax.f32 %v531_v1, 0.0 }
 0x116   : > { %v591_v8 = vmax.f32 %v533_v4, 0.0 }
 0x117   : > { %v592_v9 = vmax.f32 %v535_v6, 0.0 }
 0x118   : > { %v615_v10 = vpack.c.bf16 %v591_v8, %v589_v7  ;;  %v1356_v7 = vld [vmem:[%s1700_s5 + $0x18] sm:$0xff]   ;;  %v1359_v8 = vld [vmem:[%s1700_s5 + $0x30] sm:$0xff]  }
 0x119   : > { %v616_v11 = vpack.c.bf16 %v592_v9, %v590_v2  ;;  %v538_v12 = vpop.f32.mrb[16].mxu0  ;;  %1261 = vmatprep.subr.bf16.mxu0 %v1356_v7  ;;  %1290 = vmatprep.subr.bf16.mxu1 %v1356_v7  ;;  %v1360_v2 = vld [vmem:[%s1700_s5 + $0x38] sm:$0xff]  }
 0x11a   : > { %v539_v13 = vadd.f32 %v538_v12, %v1578_v18  ;;  %v540_v14 = vpop.f32.mrb[17].mxu0  ;;  %1262 = vmatpush3.bf16.msra.mxu0 %v1356_v7  ;;  %1298 = vmatpush3.bf16.msra.mxu1 %v1356_v7 }
 0x11b   : > { %v541_v15 = vadd.f32 %v540_v14, %v1580_v19  ;;  %v542_v16 = vpop.f32.mrb[18].mxu0  ;;  %816 = vmatprep.mubr.bf16.mxu1 %v616_v11 }
 0x11c   : > { %v543_v17 = vadd.f32 %v542_v16, %v1578_v18  ;;  %v544_v20 = vpop.f32.mrb[19].mxu0  ;;  %817 = vmatmul.mubr.bf16.gmra.mrb[12].mxu1 %v615_v10  ;;  %v593_v22 = vmax.f32 %v539_v13, 0.0  ;;  %v1632_v10 = vld [vmem:[%s1699_s4] ss:$0 sm:$0xff] }
 0x11d   : > { %v545_v21 = vadd.f32 %v544_v20, %v1580_v19  ;;  %v594_v24 = vmax.f32 %v541_v15, 0.0 }
 0x11e   : > { %v595_v23 = vmax.f32 %v543_v17, 0.0 }
 0x11f   : > { %v596_v25 = vmax.f32 %v545_v21, 0.0 }
 0x120   : > { %v617_v26 = vpack.c.bf16 %v595_v23, %v593_v22 }
 0x121   : > { %v618_v27 = vpack.c.bf16 %v596_v25, %v594_v24  ;;  %v548_v28 = vpop.f32.mrb[20].mxu0 }
 0x122   : > { %v549_v29 = vadd.f32 %v548_v28, %v1578_v18  ;;  %v550_v30 = vpop.f32.mrb[21].mxu0 }
 0x123   : > { %v551_v31 = vadd.f32 %v550_v30, %v1580_v19  ;;  %v552_v32 = vpop.f32.mrb[22].mxu0  ;;  %824 = vmatprep.mubr.bf16.mxu1 %v618_v27 }
 0x124   : > { %v553_v33 = vadd.f32 %v552_v32, %v1578_v18  ;;  %v554_v34 = vpop.f32.mrb[23].mxu0  ;;  %825 = vmatmul.mubr.bf16.gmra.mrb[16].mxu1 %v617_v26  ;;  %v597_v36 = vmax.f32 %v549_v29, 0.0 }
 0x125   : > { %v555_v35 = vadd.f32 %v554_v34, %v1580_v19  ;;  %v598_v38 = vmax.f32 %v551_v31, 0.0 }
 0x126   : > { %v599_v37 = vmax.f32 %v553_v33, 0.0 }
 0x127   : > { %v600_v39 = vmax.f32 %v555_v35, 0.0 }
 0x128   : > { %v619_v40 = vpack.c.bf16 %v599_v37, %v597_v36 }
 0x129   : > { %v620_v41 = vpack.c.bf16 %v600_v39, %v598_v38  ;;  %v558_v42 = vpop.f32.mrb[24].mxu0 }
 0x12a   : > { %v559_v43 = vadd.f32 %v558_v42, %v1578_v18  ;;  %v560_v44 = vpop.f32.mrb[25].mxu0 }
 0x12b   : > { %v561_v45 = vadd.f32 %v560_v44, %v1580_v19  ;;  %v562_v46 = vpop.f32.mrb[26].mxu0  ;;  %832 = vmatprep.mubr.bf16.mxu1 %v620_v41 }
 0x12c   : > { %v563_v47 = vadd.f32 %v562_v46, %v1578_v18  ;;  %v564_v48 = vpop.f32.mrb[27].mxu0  ;;  %833 = vmatmul.mubr.bf16.gmra.mrb[20].mxu1 %v619_v40  ;;  %v601_v50 = vmax.f32 %v559_v43, 0.0 }
 0x12d   : > { %v565_v49 = vadd.f32 %v564_v48, %v1580_v19  ;;  %v602_v52 = vmax.f32 %v561_v45, 0.0 }
 0x12e   : > { %v603_v51 = vmax.f32 %v563_v47, 0.0 }
 0x12f   : > { %v604_v53 = vmax.f32 %v565_v49, 0.0 }
 0x130   : > { %v621_v54 = vpack.c.bf16 %v603_v51, %v601_v50 }
 0x131   : > { %v622_v55 = vpack.c.bf16 %v604_v53, %v602_v52  ;;  %v568_v56 = vpop.f32.mrb[28].mxu0 }
 0x132   : > { %v569_v57 = vadd.f32 %v568_v56, %v1578_v18  ;;  %v570_v58 = vpop.f32.mrb[29].mxu0 }
 0x133   : > { %v571_v59 = vadd.f32 %v570_v58, %v1580_v19  ;;  %v572_v60 = vpop.f32.mrb[30].mxu0  ;;  %840 = vmatprep.mubr.bf16.mxu1 %v622_v55 }
 0x134   : > { %v573_v61 = vadd.f32 %v572_v60, %v1578_v18  ;;  %v574_v62 = vpop.f32.mrb[31].mxu0  ;;  %841 = vmatmul.mubr.bf16.gmra.mrb[24].mxu1 %v621_v54  ;;  %v605_v0 = vmax.f32 %v569_v57, 0.0  ;;  %v1357_v18 = vld [vmem:[%s1700_s5 + $0x20] sm:$0xff]  }
 0x135   : > { %v575_v63 = vadd.f32 %v574_v62, %v1580_v19  ;;  %v606_v3 = vmax.f32 %v571_v59, 0.0  ;;  %1263 = vmatprep.subr.bf16.mxu0 %v1357_v18  ;;  %1291 = vmatprep.subr.bf16.mxu1 %v1357_v18  ;;  %v1358_v19 = vld [vmem:[%s1700_s5 + $0x28] sm:$0xff]  }
 0x136   : > { %v607_v1 = vmax.f32 %v573_v61, 0.0  ;;  %1264 = vmatpush3.bf16.msra.mxu0 %v1357_v18  ;;  %1299 = vmatpush3.bf16.msra.mxu1 %v1357_v18 }
 0x137   : > { %v608_v4 = vmax.f32 %v575_v63, 0.0  ;;  %1265 = vmatprep.subr.bf16.mxu0 %v1358_v19  ;;  %1292 = vmatprep.subr.bf16.mxu1 %v1358_v19 }
 0x138   : > { %v623_v5 = vpack.c.bf16 %v607_v1, %v605_v0 }
 0x139   : > { %v624_v6 = vpack.c.bf16 %v608_v4, %v606_v3 }
 0x13a   : > { %1266 = vmatpush3.bf16.msra.mxu0 %v1358_v19  ;;  %1300 = vmatpush3.bf16.msra.mxu1 %v1358_v19 }
 0x13b   : > { %848 = vmatprep.mubr.bf16.mxu1 %v624_v6  ;;  %1267 = vmatprep.subr.bf16.mxu0 %v1359_v8 }
 0x13c   : > { %849 = vmatmul.mubr.bf16.gmra.mrb[28].mxu1 %v623_v5  ;;  %1293 = vmatprep.subr.bf16.mxu1 %v1359_v8 }
 0x13e   : > { %1268 = vmatpush3.bf16.msra.mxu0 %v1359_v8  ;;  %1301 = vmatpush3.bf16.msra.mxu1 %v1359_v8 }
 0x13f   : > { %1269 = vmatprep.subr.bf16.mxu0 %v1360_v2  ;;  %1294 = vmatprep.subr.bf16.mxu1 %v1360_v2 }
 0x142   : > { %1270 = vmatpush3.bf16.msra.mxu0 %v1360_v2  ;;  %1302 = vmatpush3.bf16.msra.mxu1 %v1360_v2 }
 0x1d7   : > { %v1191_v9 = vpop.f32.mrb[0].mxu1 }
 0x1d8   : > { %v1192_v11 = vpop.f32.mrb[1].mxu1 }
 0x1d9   : > { %v1193_v12 = vadd.f32 %v1192_v11, %v1191_v9  ;;  %v1194_v13 = vpop.f32.mrb[2].mxu1 }
 0x1da   : > { %v1195_v14 = vpop.f32.mrb[3].mxu1 }
 0x1db   : > { %v795_v15 = vadd.f32 %v1193_v12, %v1632_v10  ;;  %v1196_v16 = vadd.f32 %v1195_v14, %v1194_v13 }
 0x1dd   : > { %v798_v17 = vadd.f32 %v1196_v16, %v1632_v10  ;;  %v857_v20 = vmax.f32 %v795_v15, 0.0 }
 0x1df   : > { %v858_v21 = vmax.f32 %v798_v17, 0.0  ;;  %v1197_v22 = vpop.f32.mrb[4].mxu1 }
 0x1e0   : > { %v1198_v23 = vpop.f32.mrb[5].mxu1 }
 0x1e1   : > { %v1199_v24 = vadd.f32 %v1198_v23, %v1197_v22  ;;  %v1200_v25 = vpop.f32.mrb[6].mxu1  ;;  %v873_v26 = vpack.c.bf16 %v858_v21, %v857_v20 }
 0x1e2   : > { %v1201_v27 = vpop.f32.mrb[7].mxu1 }
 0x1e3   : > { %v803_v28 = vadd.f32 %v1199_v24, %v1632_v10  ;;  %v1202_v29 = vadd.f32 %v1201_v27, %v1200_v25  ;;  %1271 = vmatprep.mubr.bf16.mxu0 %v873_v26 }
 0x1e5   : > { %v806_v30 = vadd.f32 %v1202_v29, %v1632_v10  ;;  %v859_v31 = vmax.f32 %v803_v28, 0.0 }
 0x1e7   : > { %v860_v32 = vmax.f32 %v806_v30, 0.0  ;;  %v1203_v33 = vpop.f32.mrb[8].mxu1 }
 0x1e8   : > { %v1204_v34 = vpop.f32.mrb[9].mxu1 }
 0x1e9   : > { %v874_v35 = vpack.c.bf16 %v860_v32, %v859_v31  ;;  %v1205_v36 = vadd.f32 %v1204_v34, %v1203_v33  ;;  %v1206_v37 = vpop.f32.mrb[10].mxu1 }
 0x1ea   : > { %v1207_v38 = vpop.f32.mrb[11].mxu1 }
 0x1eb   : > { %v811_v39 = vadd.f32 %v1205_v36, %v1632_v10  ;;  %v1208_v40 = vadd.f32 %v1207_v38, %v1206_v37  ;;  %1272 = vmatmul.mubr.bf16.vlgmr.msra.gmra.mrb[32].mxu0 %v874_v35  ;;  %v1164_v37 = vld [vmem:[%s1701_s6] ss:$0 sm:$0xff] }
 0x1ed   : > { %v814_v41 = vadd.f32 %v1208_v40, %v1632_v10  ;;  %v861_v42 = vmax.f32 %v811_v39, 0.0 }
 0x1ef   : > { %v862_v43 = vmax.f32 %v814_v41, 0.0  ;;  %v1209_v44 = vpop.f32.mrb[12].mxu1 }
 0x1f0   : > { %v1210_v45 = vpop.f32.mrb[13].mxu1 }
 0x1f1   : > { %v1211_v46 = vadd.f32 %v1210_v45, %v1209_v44  ;;  %v1212_v47 = vpop.f32.mrb[14].mxu1  ;;  %v875_v48 = vpack.c.bf16 %v862_v43, %v861_v42 }
 0x1f2   : > { %v1213_v49 = vpop.f32.mrb[15].mxu1 }
 0x1f3   : > { %v819_v50 = vadd.f32 %v1211_v46, %v1632_v10  ;;  %v1214_v51 = vadd.f32 %v1213_v49, %v1212_v47  ;;  %1275 = vmatprep.mubr.bf16.mxu0 %v875_v48 }
 0x1f5   : > { %v822_v52 = vadd.f32 %v1214_v51, %v1632_v10  ;;  %v863_v53 = vmax.f32 %v819_v50, 0.0 }
 0x1f7   : > { %v864_v54 = vmax.f32 %v822_v52, 0.0  ;;  %v1215_v55 = vpop.f32.mrb[16].mxu1 }
 0x1f8   : > { %v1216_v56 = vpop.f32.mrb[17].mxu1 }
 0x1f9   : > { %v1217_v57 = vadd.f32 %v1216_v56, %v1215_v55  ;;  %v1218_v58 = vpop.f32.mrb[18].mxu1  ;;  %v876_v59 = vpack.c.bf16 %v864_v54, %v863_v53 }
 0x1fa   : > { %v1219_v60 = vpop.f32.mrb[19].mxu1 }
 0x1fb   : > { %v827_v61 = vadd.f32 %v1217_v57, %v1632_v10  ;;  %v1220_v62 = vadd.f32 %v1219_v60, %v1218_v58  ;;  %1276 = vmatmul.mubr.bf16.gmra.mrb[36].mxu0 %v876_v59 }
 0x1fd   : > { %v830_v63 = vadd.f32 %v1220_v62, %v1632_v10  ;;  %v865_v0 = vmax.f32 %v827_v61, 0.0 }
 0x1ff   : > { %v866_v1 = vmax.f32 %v830_v63, 0.0  ;;  %v1221_v3 = vpop.f32.mrb[20].mxu1 }
 0x200   : > { %v1222_v4 = vpop.f32.mrb[21].mxu1 }
 0x201   : > { %v1223_v5 = vadd.f32 %v1222_v4, %v1221_v3  ;;  %v1224_v6 = vpop.f32.mrb[22].mxu1  ;;  %v877_v7 = vpack.c.bf16 %v866_v1, %v865_v0 }
 0x202   : > { %v1225_v18 = vpop.f32.mrb[23].mxu1 }
 0x203   : > { %v835_v19 = vadd.f32 %v1223_v5, %v1632_v10  ;;  %v1226_v8 = vadd.f32 %v1225_v18, %v1224_v6  ;;  %1279 = vmatprep.mubr.bf16.mxu1 %v877_v7 }
 0x205   : > { %v838_v2 = vadd.f32 %v1226_v8, %v1632_v10  ;;  %v867_v9 = vmax.f32 %v835_v19, 0.0 }
 0x207   : > { %v868_v11 = vmax.f32 %v838_v2, 0.0  ;;  %v1227_v12 = vpop.f32.mrb[24].mxu1 }
 0x208   : > { %v1228_v13 = vpop.f32.mrb[25].mxu1 }
 0x209   : > { %v878_v14 = vpack.c.bf16 %v868_v11, %v867_v9  ;;  %v1229_v15 = vadd.f32 %v1228_v13, %v1227_v12  ;;  %v1230_v16 = vpop.f32.mrb[26].mxu1 }
 0x20a   : > { %v1231_v17 = vpop.f32.mrb[27].mxu1 }
 0x20b   : > { %v843_v20 = vadd.f32 %v1229_v15, %v1632_v10  ;;  %v1232_v21 = vadd.f32 %v1231_v17, %v1230_v16  ;;  %1280 = vmatmul.mubr.bf16.vlgmr.msra.gmra.mrb[32].mxu1 %v878_v14 }
 0x20d   : > { %v846_v22 = vadd.f32 %v1232_v21, %v1632_v10  ;;  %v869_v23 = vmax.f32 %v843_v20, 0.0 }
 0x20f   : > { %v870_v24 = vmax.f32 %v846_v22, 0.0  ;;  %v1233_v25 = vpop.f32.mrb[28].mxu1 }
 0x210   : > { %v1234_v26 = vpop.f32.mrb[29].mxu1 }
 0x211   : > { %v1235_v27 = vadd.f32 %v1234_v26, %v1233_v25  ;;  %v1236_v28 = vpop.f32.mrb[30].mxu1  ;;  %v879_v29 = vpack.c.bf16 %v870_v24, %v869_v23 }
 0x212   : > { %v1237_v30 = vpop.f32.mrb[31].mxu1 }
 0x213   : > { %v851_v31 = vadd.f32 %v1235_v27, %v1632_v10  ;;  %v1238_v32 = vadd.f32 %v1237_v30, %v1236_v28  ;;  %1283 = vmatprep.mubr.bf16.mxu1 %v879_v29 }
 0x215   : > { %v854_v33 = vadd.f32 %v1238_v32, %v1632_v10  ;;  %v871_v34 = vmax.f32 %v851_v31, 0.0 }
 0x217   : > { %v872_v35 = vmax.f32 %v854_v33, 0.0 }
 0x219   : > { %v880_v36 = vpack.c.bf16 %v872_v35, %v871_v34 }
 0x21b   : > { %1284 = vmatmul.mubr.bf16.gmra.mrb[36].mxu1 %v880_v36 }
 0x2be   : > { %v1273_v38 = vpop.f32.mrb[32].mxu0 }
 0x2bf   : > { %v995_v10 = vadd.f32 %v1273_v38, %v1164_v37  ;;  %v986_v39 = vpop.f32.mrb[33].mxu0 }
 0x2c0   : > { %v987_v40 = vadd.f32 %v1164_v37, %v986_v39  ;;  %v1274_v41 = vpop.f32.mrb[34].mxu0 }
 0x2c1   : > { %1052 = vst.msk [vmem:[%s1658_s16 + $0x10] sm:$0xff] %vm1049_vm1, %v995_v10  ;;  %v998_v42 = vadd.f32 %v1274_v41, %v1164_v37  ;;  %v989_v43 = vpop.f32.mrb[35].mxu0 }
 0x2c2   : > { %1050 = vst.msk [vmem:[%s1658_s16] sm:$0xff] %vm1049_vm1, %v987_v40  ;;  %v990_v44 = vadd.f32 %v1164_v37, %v989_v43 }
 0x2c3   : > { %1053 = vst.msk [vmem:[%s1658_s16 + $0x18] sm:$0xff] %vm1049_vm1, %v998_v42 }
 0x2c4   : > { %1051 = vst.msk [vmem:[%s1658_s16 + $0x8] sm:$0xff] %vm1049_vm1, %v990_v44 }
 0x2ce   : > { %v1277_v45 = vpop.f32.mrb[36].mxu0 }
 0x2cf   : > { %v1011_v46 = vadd.f32 %v1277_v45, %v1164_v37  ;;  %v1002_v47 = vpop.f32.mrb[37].mxu0 }
 0x2d0   : > { %v1003_v48 = vadd.f32 %v1164_v37, %v1002_v47  ;;  %v1278_v49 = vpop.f32.mrb[38].mxu0 }
 0x2d1   : > { %1056 = vst.msk [vmem:[%s1658_s16 + $0x30] sm:$0xff] %vm1049_vm1, %v1011_v46  ;;  %v1014_v50 = vadd.f32 %v1278_v49, %v1164_v37  ;;  %v1005_v51 = vpop.f32.mrb[39].mxu0 }
 0x2d2   : > { %1054 = vst.msk [vmem:[%s1658_s16 + $0x20] sm:$0xff] %vm1049_vm1, %v1003_v48  ;;  %v1006_v52 = vadd.f32 %v1164_v37, %v1005_v51 }
 0x2d3   : > { %1057 = vst.msk [vmem:[%s1658_s16 + $0x38] sm:$0xff] %vm1049_vm1, %v1014_v50 }
 0x2d4   : > { %1055 = vst.msk [vmem:[%s1658_s16 + $0x28] sm:$0xff] %vm1049_vm1, %v1006_v52 }
 0x2de   : > { %v1281_v53 = vpop.f32.mrb[32].mxu1 }
 0x2df   : > { %v1027_v54 = vadd.f32 %v1281_v53, %v1164_v37  ;;  %v1018_v55 = vpop.f32.mrb[33].mxu1 }
 0x2e0   : > { %v1019_v56 = vadd.f32 %v1164_v37, %v1018_v55  ;;  %v1282_v57 = vpop.f32.mrb[34].mxu1 }
 0x2e1   : > { %1060 = vst.msk [vmem:[%s1658_s16 + $0x50] sm:$0xff] %vm1049_vm1, %v1027_v54  ;;  %v1030_v58 = vadd.f32 %v1282_v57, %v1164_v37  ;;  %v1021_v59 = vpop.f32.mrb[35].mxu1 }
 0x2e2   : > { %1058 = vst.msk [vmem:[%s1658_s16 + $0x40] sm:$0xff] %vm1049_vm1, %v1019_v56  ;;  %v1022_v60 = vadd.f32 %v1164_v37, %v1021_v59 }
 0x2e3   : > { %1061 = vst.msk [vmem:[%s1658_s16 + $0x58] sm:$0xff] %vm1049_vm1, %v1030_v58 }
 0x2e4   : > { %1059 = vst.msk [vmem:[%s1658_s16 + $0x48] sm:$0xff] %vm1049_vm1, %v1022_v60 }
 0x2ee   : > { %v1285_v61 = vpop.f32.mrb[36].mxu1 }
 0x2ef   : > { %v1043_v62 = vadd.f32 %v1285_v61, %v1164_v37  ;;  %v1034_v63 = vpop.f32.mrb[37].mxu1 }
 0x2f0   : > { %v1035_v0 = vadd.f32 %v1164_v37, %v1034_v63  ;;  %v1286_v1 = vpop.f32.mrb[38].mxu1 }
 0x2f1   : > { %1064 = vst.msk [vmem:[%s1658_s16 + $0x70] sm:$0xff] %vm1049_vm1, %v1043_v62  ;;  %v1046_v3 = vadd.f32 %v1286_v1, %v1164_v37  ;;  %v1037_v4 = vpop.f32.mrb[39].mxu1 }
 0x2f2   : > { %1062 = vst.msk [vmem:[%s1658_s16 + $0x60] sm:$0xff] %vm1049_vm1, %v1035_v0  ;;  %v1038_v5 = vadd.f32 %v1164_v37, %v1037_v4 }
 0x2f3   : > { %1065 = vst.msk [vmem:[%s1658_s16 + $0x78] sm:$0xff] %vm1049_vm1, %v1046_v3 }
 0x2f4   : > { %1063 = vst.msk [vmem:[%s1658_s16 + $0x68] sm:$0xff] %vm1049_vm1, %v1038_v5 }
 0x2f5 PF: > { %s17_s24 = sadd.s32 1, %s1367_s24  }
 0x2f6   : > { %p14_p4 = scmp.ge.s32.totalorder %s17_s24, 5  }
 0x2f8   :  { %16 = sbr.rel (!%p14_p4) target bundleno = 1 (0x1), region = 78 }

</bundles_post_ra>
